<compile_context>
chip_gen: v7x
topology: tpu7x:2x2x1
jax: 0.10.0
libtpu: 0.0.40
codegen_flags: <defaults>
</compile_context>

<pallas_src>
import jax
import jax.numpy as jnp
from jax import lax
from jax.experimental import pallas as pl
from jax.experimental.pallas import tpu as pltpu


def _round_up(x: int, m: int) -> int:
    return (x + m - 1) // m * m


def typed_node_embedding_kernel(ids_ref, tab_ref, out_ref):
    """One vocab-slab step: out += onehot_counts(ids, slab) @ table_slab."""
    v = pl.program_id(1)

    @pl.when(v == 0)
    def _():
        out_ref[...] = jnp.zeros_like(out_ref)

    ids = ids_ref[...]                          # [B, T_total] int32
    B, T = ids.shape
    Vc = tab_ref.shape[0]                       # slab width (static)
    base = v * Vc                               # element offset of this slab

    # Integer count accumulation over the small static T axis (cmp + int add).
    iota = base + lax.broadcasted_iota(jnp.int32, (B, Vc), 1)
    counts = jnp.zeros((B, Vc), dtype=jnp.int32)
    for t in range(T):                          # T is a static block constant
        counts = counts + (ids[:, t][:, None] == iota).astype(jnp.int32)

    # Single convert per slab; MXU matmul in the table's native dtype with
    # f32 accumulation into the resident output block.
    out_ref[...] += jnp.dot(counts.astype(tab_ref.dtype), tab_ref[...],
                            preferred_element_type=jnp.float32)


def prepare_fused_table(tok_tab, type_tab, node_tab, *, v_slab=256):
    """Concatenate + pad the three embedding tables ONCE (module-init time).

    Keeps the tables' native dtype (bf16 tables avoid the emulated f32 MXU
    path).  Returns (fused_table[V_pad, E_pad], (V_tok, V_type), emb_size).
    """
    assert tok_tab.shape[1] == type_tab.shape[1] == node_tab.shape[1]
    E = tok_tab.shape[1]
    V_tok, V_type, V_node = tok_tab.shape[0], type_tab.shape[0], node_tab.shape[0]
    V_total = V_tok + V_type + V_node
    V_pad = _round_up(V_total, v_slab)
    E_pad = _round_up(E, 128)                   # minimum lane-dense padding
    fused = jnp.concatenate([tok_tab, type_tab, node_tab], axis=0)
    fused = jnp.pad(fused, ((0, V_pad - V_total), (0, E_pad - E)))
    return fused, (V_tok, V_type), E


def typed_node_embedding(tok_ids, type_ids, node_ids, fused_tab, offsets,
                         emb_size, *, tile_n=256, v_slab=256):
    N = tok_ids.shape[0]
    V_tok, V_type = offsets
    V_pad, E_pad = fused_tab.shape
    assert V_pad % v_slab == 0

    # Fuse ids: shift type / node ids into the concatenated vocab space.
    # (Out-of-range / negative ids contribute zero; pad rows are zero rows.)
    fused_ids = jnp.concatenate(
        [tok_ids.astype(jnp.int32),
         type_ids.astype(jnp.int32) + V_tok,
         node_ids.reshape(N, 1).astype(jnp.int32) + (V_tok + V_type)],
        axis=1)                                 # [N, T_total]
    T_total = fused_ids.shape[1]

    # Node tiling (clamped for small N); padded rows use id 0 and are sliced.
    tile_n = max(8, min(tile_n, _round_up(N, 8)))
    N_pad = _round_up(N, tile_n)
    if N_pad != N:
        fused_ids = jnp.pad(fused_ids, ((0, N_pad - N), (0, 0)))

    n_tiles = N_pad // tile_n
    n_slabs = V_pad // v_slab
    grid = (n_tiles, n_slabs)

    # VMEM budget: double-buffered ids + table slab, resident output tile,
    # plus headroom; capped so the same kernel fits v7x's 64 MiB/TC.
    elt = fused_tab.dtype.itemsize
    est = (2 * tile_n * T_total * 4          # ids (double-buffered)
           + 2 * v_slab * E_pad * elt        # table slab (double-buffered)
           + tile_n * E_pad * 4)             # resident f32 output block
    vmem_limit = min(48 * 1024 * 1024, max(32 * 1024 * 1024, 2 * est))

    out = pl.pallas_call(
        typed_node_embedding_kernel,
        out_shape=jax.ShapeDtypeStruct((N_pad, E_pad), jnp.float32),
        grid_spec=pltpu.PrefetchScalarGridSpec(
            num_scalar_prefetch=0,
            grid=grid,
            in_specs=[
                # ids block is constant across the v axis -> not re-fetched.
                pl.BlockSpec((tile_n, T_total), lambda i, v: (i, 0)),
                # Table tiled over the vocab axis: only one slab (plus its
                # prefetch buffer) is VMEM-resident at any time.
                pl.BlockSpec((v_slab, E_pad), lambda i, v: (v, 0)),
            ],
            # Same output block across v -> resident accumulator.
            out_specs=pl.BlockSpec((tile_n, E_pad), lambda i, v: (i, 0)),
        ),
        compiler_params=pltpu.CompilerParams(
            dimension_semantics=("parallel", "arbitrary"),
            vmem_limit_bytes=vmem_limit,
        ),
    )(fused_ids, fused_tab)

    return out[:N, :emb_size]


def _make_table(key, vocab_size, emb_size, pad_idx=0):
    tab = jax.random.normal(key, (vocab_size, emb_size), dtype=jnp.float32)
    # nn.Embedding(padding_idx=pad_idx): that row is zero.
    return tab.at[pad_idx].set(0.0)


if __name__ == "__main__":
    # Small synthetic config (deterministic).
    N = 16            # number of graph nodes
    E = 32            # config.embedding_size
    T_TOK = 8         # sub-tokens per node (graph.ndata[TOKEN] second dim)
    T_TYPE = 4        # sub-types per node (graph.ndata[TYPE] second dim)
    V_TOK, V_TYPE, V_NODE = 64, 48, 80
    PAD = 0

    key = jax.random.PRNGKey(0)
    k1, k2, k3, k4, k5, k6 = jax.random.split(key, 6)

    tok_tab = _make_table(k1, V_TOK, E, PAD)
    type_tab = _make_table(k2, V_TYPE, E, PAD)
    node_tab = _make_table(k3, V_NODE, E, PAD)

    tok_ids = jax.random.randint(k4, (N, T_TOK), 0, V_TOK, dtype=jnp.int32)
    type_ids = jax.random.randint(k5, (N, T_TYPE), 0, V_TYPE, dtype=jnp.int32)
    node_ids = jax.random.randint(k6, (N,), 0, V_NODE, dtype=jnp.int32)

    # Table fusion hoisted out of the forward call (module-init time).
    fused_tab, offsets, emb_size = prepare_fused_table(tok_tab, type_tab,
                                                       node_tab)

    out = typed_node_embedding(tok_ids, type_ids, node_ids,
                               fused_tab, offsets, emb_size)
    out = jax.block_until_ready(out)

    # Pure-JAX reference for sanity.
    ref = (jnp.take(tok_tab, tok_ids, axis=0).sum(1)
           + jnp.take(type_tab, type_ids, axis=0).sum(1)
           + jnp.take(node_tab, node_ids, axis=0))
    assert out.shape == (N, E) and out.dtype == jnp.float32
    assert jnp.allclose(out, ref, atol=1e-4, rtol=1e-4)

    print("KERNEL_OK")
</pallas_src>

<mosaic_0001>
module attributes {stable_mosaic.version = 11 : i64} {
  func.func @typed_node_embedding_kernel(%arg0: i32, %arg1: i32, %arg2: memref<16x13xi32, #tpu.memory_space<vmem>>, %arg3: memref<256x128xf32, #tpu.memory_space<vmem>>, %arg4: memref<16x128xf32, #tpu.memory_space<vmem>>) attributes {dimension_semantics = [#tpu.dimension_semantics<parallel>, #tpu.dimension_semantics<arbitrary>], iteration_bounds = array<i64: 1, 1>, scalar_prefetch = 0 : i64, scratch_operands = 0 : i64, tpu.core_type = #tpu.core_type<tc>, window_params = [{transform_indices = @transform_0, window_bounds = array<i64: 16, 13>}, {transform_indices = @transform_1, window_bounds = array<i64: 256, 128>}, {transform_indices = @transform_2, window_bounds = array<i64: 16, 128>}]} {
    %c0_i32 = arith.constant 0 : i32
    %0 = arith.cmpi eq, %arg1, %c0_i32 : i32
    %1 = arith.extui %0 : i1 to i32
    %c0_i32_0 = arith.constant 0 : i32
    %2 = arith.cmpi ne, %1, %c0_i32_0 : i32
    scf.if %2 {
      %cst_9 = arith.constant 0.000000e+00 : f32
      %106 = vector.broadcast %cst_9 : f32 to vector<16x128xf32>
      %c0_10 = arith.constant 0 : index
      %c0_11 = arith.constant 0 : index
      %107 = vector.load %arg4[%c0_10, %c0_11] : memref<16x128xf32, #tpu.memory_space<vmem>>, vector<16x128xf32>
      tpu.vector_store %arg4[%c0_10, %c0_11], %106 {strides = array<i32>} : memref<16x128xf32, #tpu.memory_space<vmem>>, vector<16x128xf32>,
    } else {
    }
    %c0 = arith.constant 0 : index
    %c0_1 = arith.constant 0 : index
    %3 = vector.load %arg2[%c0, %c0_1] : memref<16x13xi32, #tpu.memory_space<vmem>>, vector<16x13xi32>
    %c256_i32 = arith.constant 256 : i32
    %4 = arith.muli %arg1, %c256_i32 : i32
    %5 = tpu.iota {dimensions = array<i32: 1>} : vector<16x256xi32>
    %6 = vector.broadcast %4 : i32 to vector<16x256xi32>
    %7 = arith.addi %6, %5 : vector<16x256xi32>
    %c0_i32_2 = arith.constant 0 : i32
    %8 = vector.broadcast %c0_i32_2 : i32 to vector<16x256xi32>
    %9 = vector.extract_strided_slice %3 {offsets = [0, 0], sizes = [16, 1], strides = [1, 1]} : vector<16x13xi32> to vector<16x1xi32>
    %10 = vector.shape_cast %9 : vector<16x1xi32> to vector<16xi32>
    %11 = vector.shape_cast %10 : vector<16xi32> to vector<16x1xi32>
    %12 = vector.broadcast %11 : vector<16x1xi32> to vector<16x256xi32>
    %13 = arith.cmpi eq, %12, %7 : vector<16x256xi32>
    %14 = arith.extui %13 : vector<16x256xi1> to vector<16x256xi32>
    %15 = arith.addi %8, %14 : vector<16x256xi32>
    %16 = vector.extract_strided_slice %3 {offsets = [0, 1], sizes = [16, 1], strides = [1, 1]} : vector<16x13xi32> to vector<16x1xi32>
    %17 = vector.shape_cast %16 : vector<16x1xi32> to vector<16xi32>
    %18 = vector.shape_cast %17 : vector<16xi32> to vector<16x1xi32>
    %19 = vector.broadcast %18 : vector<16x1xi32> to vector<16x256xi32>
    %20 = arith.cmpi eq, %19, %7 : vector<16x256xi32>
    %21 = arith.extui %20 : vector<16x256xi1> to vector<16x256xi32>
    %22 = arith.addi %15, %21 : vector<16x256xi32>
    %23 = vector.extract_strided_slice %3 {offsets = [0, 2], sizes = [16, 1], strides = [1, 1]} : vector<16x13xi32> to vector<16x1xi32>
    %24 = vector.shape_cast %23 : vector<16x1xi32> to vector<16xi32>
    %25 = vector.shape_cast %24 : vector<16xi32> to vector<16x1xi32>
    %26 = vector.broadcast %25 : vector<16x1xi32> to vector<16x256xi32>
    %27 = arith.cmpi eq, %26, %7 : vector<16x256xi32>
    %28 = arith.extui %27 : vector<16x256xi1> to vector<16x256xi32>
    %29 = arith.addi %22, %28 : vector<16x256xi32>
    %30 = vector.extract_strided_slice %3 {offsets = [0, 3], sizes = [16, 1], strides = [1, 1]} : vector<16x13xi32> to vector<16x1xi32>
    %31 = vector.shape_cast %30 : vector<16x1xi32> to vector<16xi32>
    %32 = vector.shape_cast %31 : vector<16xi32> to vector<16x1xi32>
    %33 = vector.broadcast %32 : vector<16x1xi32> to vector<16x256xi32>
    %34 = arith.cmpi eq, %33, %7 : vector<16x256xi32>
    %35 = arith.extui %34 : vector<16x256xi1> to vector<16x256xi32>
    %36 = arith.addi %29, %35 : vector<16x256xi32>
    %37 = vector.extract_strided_slice %3 {offsets = [0, 4], sizes = [16, 1], strides = [1, 1]} : vector<16x13xi32> to vector<16x1xi32>
    %38 = vector.shape_cast %37 : vector<16x1xi32> to vector<16xi32>
    %39 = vector.shape_cast %38 : vector<16xi32> to vector<16x1xi32>
    %40 = vector.broadcast %39 : vector<16x1xi32> to vector<16x256xi32>
    %41 = arith.cmpi eq, %40, %7 : vector<16x256xi32>
    %42 = arith.extui %41 : vector<16x256xi1> to vector<16x256xi32>
    %43 = arith.addi %36, %42 : vector<16x256xi32>
    %44 = vector.extract_strided_slice %3 {offsets = [0, 5], sizes = [16, 1], strides = [1, 1]} : vector<16x13xi32> to vector<16x1xi32>
    %45 = vector.shape_cast %44 : vector<16x1xi32> to vector<16xi32>
    %46 = vector.shape_cast %45 : vector<16xi32> to vector<16x1xi32>
    %47 = vector.broadcast %46 : vector<16x1xi32> to vector<16x256xi32>
    %48 = arith.cmpi eq, %47, %7 : vector<16x256xi32>
    %49 = arith.extui %48 : vector<16x256xi1> to vector<16x256xi32>
    %50 = arith.addi %43, %49 : vector<16x256xi32>
    %51 = vector.extract_strided_slice %3 {offsets = [0, 6], sizes = [16, 1], strides = [1, 1]} : vector<16x13xi32> to vector<16x1xi32>
    %52 = vector.shape_cast %51 : vector<16x1xi32> to vector<16xi32>
    %53 = vector.shape_cast %52 : vector<16xi32> to vector<16x1xi32>
    %54 = vector.broadcast %53 : vector<16x1xi32> to vector<16x256xi32>
    %55 = arith.cmpi eq, %54, %7 : vector<16x256xi32>
    %56 = arith.extui %55 : vector<16x256xi1> to vector<16x256xi32>
    %57 = arith.addi %50, %56 : vector<16x256xi32>
    %58 = vector.extract_strided_slice %3 {offsets = [0, 7], sizes = [16, 1], strides = [1, 1]} : vector<16x13xi32> to vector<16x1xi32>
    %59 = vector.shape_cast %58 : vector<16x1xi32> to vector<16xi32>
    %60 = vector.shape_cast %59 : vector<16xi32> to vector<16x1xi32>
    %61 = vector.broadcast %60 : vector<16x1xi32> to vector<16x256xi32>
    %62 = arith.cmpi eq, %61, %7 : vector<16x256xi32>
    %63 = arith.extui %62 : vector<16x256xi1> to vector<16x256xi32>
    %64 = arith.addi %57, %63 : vector<16x256xi32>
    %65 = vector.extract_strided_slice %3 {offsets = [0, 8], sizes = [16, 1], strides = [1, 1]} : vector<16x13xi32> to vector<16x1xi32>
    %66 = vector.shape_cast %65 : vector<16x1xi32> to vector<16xi32>
    %67 = vector.shape_cast %66 : vector<16xi32> to vector<16x1xi32>
    %68 = vector.broadcast %67 : vector<16x1xi32> to vector<16x256xi32>
    %69 = arith.cmpi eq, %68, %7 : vector<16x256xi32>
    %70 = arith.extui %69 : vector<16x256xi1> to vector<16x256xi32>
    %71 = arith.addi %64, %70 : vector<16x256xi32>
    %72 = vector.extract_strided_slice %3 {offsets = [0, 9], sizes = [16, 1], strides = [1, 1]} : vector<16x13xi32> to vector<16x1xi32>
    %73 = vector.shape_cast %72 : vector<16x1xi32> to vector<16xi32>
    %74 = vector.shape_cast %73 : vector<16xi32> to vector<16x1xi32>
    %75 = vector.broadcast %74 : vector<16x1xi32> to vector<16x256xi32>
    %76 = arith.cmpi eq, %75, %7 : vector<16x256xi32>
    %77 = arith.extui %76 : vector<16x256xi1> to vector<16x256xi32>
    %78 = arith.addi %71, %77 : vector<16x256xi32>
    %79 = vector.extract_strided_slice %3 {offsets = [0, 10], sizes = [16, 1], strides = [1, 1]} : vector<16x13xi32> to vector<16x1xi32>
    %80 = vector.shape_cast %79 : vector<16x1xi32> to vector<16xi32>
    %81 = vector.shape_cast %80 : vector<16xi32> to vector<16x1xi32>
    %82 = vector.broadcast %81 : vector<16x1xi32> to vector<16x256xi32>
    %83 = arith.cmpi eq, %82, %7 : vector<16x256xi32>
    %84 = arith.extui %83 : vector<16x256xi1> to vector<16x256xi32>
    %85 = arith.addi %78, %84 : vector<16x256xi32>
    %86 = vector.extract_strided_slice %3 {offsets = [0, 11], sizes = [16, 1], strides = [1, 1]} : vector<16x13xi32> to vector<16x1xi32>
    %87 = vector.shape_cast %86 : vector<16x1xi32> to vector<16xi32>
    %88 = vector.shape_cast %87 : vector<16xi32> to vector<16x1xi32>
    %89 = vector.broadcast %88 : vector<16x1xi32> to vector<16x256xi32>
    %90 = arith.cmpi eq, %89, %7 : vector<16x256xi32>
    %91 = arith.extui %90 : vector<16x256xi1> to vector<16x256xi32>
    %92 = arith.addi %85, %91 : vector<16x256xi32>
    %93 = vector.extract_strided_slice %3 {offsets = [0, 12], sizes = [16, 1], strides = [1, 1]} : vector<16x13xi32> to vector<16x1xi32>
    %94 = vector.shape_cast %93 : vector<16x1xi32> to vector<16xi32>
    %95 = vector.shape_cast %94 : vector<16xi32> to vector<16x1xi32>
    %96 = vector.broadcast %95 : vector<16x1xi32> to vector<16x256xi32>
    %97 = arith.cmpi eq, %96, %7 : vector<16x256xi32>
    %98 = arith.extui %97 : vector<16x256xi1> to vector<16x256xi32>
    %99 = arith.addi %92, %98 : vector<16x256xi32>
    %c0_3 = arith.constant 0 : index
    %c0_4 = arith.constant 0 : index
    %100 = vector.load %arg4[%c0_3, %c0_4] : memref<16x128xf32, #tpu.memory_space<vmem>>, vector<16x128xf32>
    %101 = arith.sitofp %99 : vector<16x256xi32> to vector<16x256xf32>
    %c0_5 = arith.constant 0 : index
    %c0_6 = arith.constant 0 : index
    %102 = vector.load %arg3[%c0_5, %c0_6] : memref<256x128xf32, #tpu.memory_space<vmem>>, vector<256x128xf32>
    %cst = arith.constant dense<0.000000e+00> : vector<16x128xf32>
    %103 = tpu.matmul %101, %102, %cst {dimension_numbers = #tpu.dot_dimension_numbers<[1], [0], [0], [1], [0, 0, 1, 1], [], []>} : vector<16x256xf32>, vector<256x128xf32>, vector<16x128xf32> -> vector<16x128xf32>
    %104 = arith.addf %100, %103 : vector<16x128xf32>
    %c0_7 = arith.constant 0 : index
    %c0_8 = arith.constant 0 : index
    %105 = vector.load %arg4[%c0_7, %c0_8] : memref<16x128xf32, #tpu.memory_space<vmem>>, vector<16x128xf32>
    tpu.vector_store %arg4[%c0_7, %c0_8], %104 {strides = array<i32>} : memref<16x128xf32, #tpu.memory_space<vmem>>, vector<16x128xf32>,
    return
  }
  func.func @transform_0(%arg0: i32, %arg1: i32) -> (i32, i32) {
    %c0_i32 = arith.constant 0 : i32
    %c0_i32_0 = arith.constant 0 : i32
    return %arg0, %c0_i32 : i32, i32
  }
  func.func @transform_1(%arg0: i32, %arg1: i32) -> (i32, i32) {
    %c0_i32 = arith.constant 0 : i32
    %c0_i32_0 = arith.constant 0 : i32
    return %arg1, %c0_i32 : i32, i32
  }
  func.func @transform_2(%arg0: i32, %arg1: i32) -> (i32, i32) {
    %c0_i32 = arith.constant 0 : i32
    %c0_i32_0 = arith.constant 0 : i32
    return %arg0, %c0_i32 : i32, i32
  }
}

</mosaic_0001>

<bundles_post_ra>
// kernel: tpu_custom_call.1
= control target key start
LH: loop header
LB: loop body
LE: loop exit
PB: predicated region body
PF: predicated region fallthrough
CT: control target
= control target key end

     0   :  { %7 = vsyncpa [#allocation3], 0  ;;  %s860_s0 = inlined_call_operand.hbm [shape: s32[16,13], index: 0, kind: input, shape index: {}]   ;;  %s861_s1 = inlined_call_operand.hbm [shape: f32[256,128], index: 1, kind: input, shape index: {}]   ;;  %s862_s2 = inlined_call_operand.hbm [shape: f32[16,128], index: 2, kind: output, shape index: {}]  }
   0x1   :  { %8 = vsyncpa [#allocation6], 0 }
   0x2   :  { %9 = vsyncpa [#allocation4], 0  ;;  %s618_s9 = smov [#allocation2]   ;;  %s546_s13 = scalar_lea.hbm %s860_s0, 256 }
   0x3   :  { %s15_s10 = sshll.u32 %s618_s9, 4  ;;  %p547_p0 = scmp.ne.s32.totalorder %s860_s0, %s546_s13  ;;  %s16_s10 = int_to_ptr.vmem [resolvable:$true] %s15_s10 }
   0x4   :  { %p550_p1 = scmp.lt.u32.totalorder %s546_s13, %s860_s0 }
   0x6   :  { %p552_p2 = pnand %p550_p1, %p547_p0 }
   0x8   :  { %555 = shalt.err (!%p552_p2)
}
   0x9   :  { %s556_s18 = scalar_lea.vmem %s16_s10, 256  ;;  %p561_p4 = scmp.lt.s32.totalorder %s16_s10, %s16_s10 }
   0xa   :  { %p557_p3 = scmp.ne.s32.totalorder %s16_s10, %s556_s18  ;;  %p562_p5 = scmp.lt.s32.totalorder %s556_s18, %s556_s18 }
   0xc   :  { %p563_p6 = por %p562_p5, %p561_p4 }
   0xe   :  { %p564_p7 = pnand %p563_p6, %p557_p3 }
  0x10   :  { %567 = shalt.err (!%p564_p7)
}
  0x11   :  { %s619_s19 = smov 128   ;;  %s620_s20 = smov 8  }
  0x12   :  { %21 = dma.hbm_to_vmem [thread:$0]  %s860_s0, 256, %s16_s10, [#allocation3], %s619_s19, %s619_s19, %s620_s20  }
  0x13   :  { %s621_s23 = smov [#allocation5]   ;;  %s568_s27 = scalar_lea.hbm %s861_s1, 4096 }
  0x14   :  { %s27_s24 = sshll.u32 %s621_s23, 4  ;;  %p569_p8 = scmp.ne.s32.totalorder %s861_s1, %s568_s27  ;;  %s28_s24 = int_to_ptr.vmem [resolvable:$true] %s27_s24 }
  0x15   :  { %p572_p9 = scmp.lt.u32.totalorder %s568_s27, %s861_s1 }
  0x17   :  { %p574_p10 = pnand %p572_p9, %p569_p8 }
  0x19   :  { %577 = shalt.err (!%p574_p10)
}
  0x1a   :  { %s578_s4 = scalar_lea.vmem %s28_s24, 4096  ;;  %p583_p12 = scmp.lt.s32.totalorder %s28_s24, %s28_s24 }
  0x1b   :  { %p579_p11 = scmp.ne.s32.totalorder %s28_s24, %s578_s4  ;;  %p584_p13 = scmp.lt.s32.totalorder %s578_s4, %s578_s4 }
  0x1d   :  { %p585_p0 = por %p584_p13, %p583_p12 }
  0x1f   :  { %p586_p1 = pnand %p585_p0, %p579_p11 }
  0x21   :  { %589 = shalt.err (!%p586_p1)
}
  0x22   :  { %33 = dma.hbm_to_vmem [thread:$0]  %s861_s1, 4096, %s28_s24, [#allocation6], %s619_s19, %s619_s19, %s620_s20  }
  0x23   :  { %612 = dma.done.wait [#allocation3], 256  }
  0x24   :  { %613 = vsyncadd [#allocation3], 4294967040 }
  0x25   :  { %614 = dma.done.wait [#allocation6], 4096  }
  0x26   :  { %615 = vsyncadd [#allocation6], 4294963200  ;;  %v622_v0 = vmov 1   ;;  %v623_v1 = vmov 0   ;;  %v682_v2 = vld [vmem:[#allocation2] sm:$0xff]  ;;  %v686_v3 = vld [vmem:[#allocation2 + $0x8] sm:$0xff] }
  0x27   :  { %526 = vset.pattern.permute.xlu1 %v622_v0  ;;  %525 = vset.pattern.permute.xlu0 %v623_v1  ;;  %v624_v4 = vmov 2   ;;  %v625_v5 = vmov 3   ;;  %v626_v6 = vmov 4   ;;  %v627_v7 = vmov 5   ;;  %v307_v13 = vld [vmem:[#allocation5 + $0x80] sm:$0xff]  ;;  %v308_v14 = vld [vmem:[#allocation5 + $0x88] sm:$0xff] }
  0x28   :  { %70 = vperm.xlu1 %526, %v682_v2   ;;  %56 = vperm.xlu0 %525, %v682_v2   ;;  %v628_v8 = vmov 6   ;;  %v629_v9 = vmov 8   ;;  %v630_v10 = vmov 9   ;;  %v631_v11 = vmov 7   ;;  %v291_v16 = vld [vmem:[#allocation5] sm:$0xff]  ;;  %v292_v17 = vld [vmem:[#allocation5 + $0x8] sm:$0xff] }
  0x29   :  { %v632_v12 = vmov 11   ;;  %v458_v15 = vpack.c.bf16 %v308_v14, %v307_v13  ;;  %v460_v18 = vpack.c.bf16 %v292_v17, %v291_v16  ;;  %v633_v19 = vmov 12   ;;  %v309_v20 = vld [vmem:[#allocation5 + $0x90] sm:$0xff]  ;;  %v310_v21 = vld [vmem:[#allocation5 + $0x98] sm:$0xff]  ;;  %v311_v26 = vld [vmem:[#allocation5 + $0xa0] sm:$0xff]  ;;  %s635_s1 = smov [#allocation7]  }
  0x2a   :  { %v462_v22 = vpack.c.bf16 %v310_v21, %v309_v20  ;;  %v293_v23 = vld [vmem:[#allocation5 + $0x10] sm:$0xff]  ;;  %v294_v24 = vld [vmem:[#allocation5 + $0x18] sm:$0xff]  ;;  %v312_v27 = vld [vmem:[#allocation5 + $0xa8] sm:$0xff]  ;;  %v634_v38 = vmov 10   ;;  %s407_s6 = sshll.u32 %s635_s1, 4  ;;  %s408_s6 = int_to_ptr.vmem [resolvable:$true] %s407_s6 }
  0x2b   :  { %490 = vmatprep.subr.bf16.mxu1 %v458_v15  ;;  %459 = vmatprep.subr.bf16.mxu0 %v458_v15  ;;  %v464_v25 = vpack.c.bf16 %v294_v24, %v293_v23  ;;  %v466_v28 = vpack.c.bf16 %v312_v27, %v311_v26  ;;  %v295_v29 = vld [vmem:[#allocation5 + $0x20] sm:$0xff]  ;;  %v296_v30 = vld [vmem:[#allocation5 + $0x28] sm:$0xff]  ;;  %v313_v32 = vld [vmem:[#allocation5 + $0xb0] sm:$0xff]  ;;  %s590_s7 = scalar_lea.vmem %s408_s6, 256  ;;  %p595_p3 = scmp.lt.s32.totalorder %s408_s6, %s408_s6 }
  0x2c   :  { %73 = vperm.xlu1 %526, %v686_v3   ;;  %59 = vperm.xlu0 %525, %v686_v3   ;;  %v468_v31 = vpack.c.bf16 %v296_v30, %v295_v29  ;;  %v314_v33 = vld [vmem:[#allocation5 + $0xb8] sm:$0xff]  ;;  %v297_v35 = vld [vmem:[#allocation5 + $0x30] sm:$0xff]  ;;  %v315_v39 = vld [vmem:[#allocation5 + $0xc0] sm:$0xff]  ;;  %p591_p2 = scmp.ne.s32.totalorder %s408_s6, %s590_s7  ;;  %p596_p4 = scmp.lt.s32.totalorder %s590_s7, %s590_s7 }
  0x2d   :  { %498 = vmatpush3.bf16.msra.mxu1 %v460_v18  ;;  %461 = vmatpush3.bf16.msra.mxu0 %v460_v18  ;;  %v470_v34 = vpack.c.bf16 %v314_v33, %v313_v32  ;;  %v298_v36 = vld [vmem:[#allocation5 + $0x38] sm:$0xff]  ;;  %v316_v40 = vld [vmem:[#allocation5 + $0xc8] sm:$0xff]  ;;  %v299_v42 = vld [vmem:[#allocation5 + $0x40] sm:$0xff] }
  0x2e   :  { %491 = vmatprep.subr.bf16.mxu1 %v462_v22  ;;  %463 = vmatprep.subr.bf16.mxu0 %v462_v22  ;;  %v472_v37 = vpack.c.bf16 %v298_v36, %v297_v35  ;;  %v474_v41 = vpack.c.bf16 %v316_v40, %v315_v39  ;;  %v300_v43 = vld [vmem:[#allocation5 + $0x48] sm:$0xff]  ;;  %v317_v45 = vld [vmem:[#allocation5 + $0xd0] sm:$0xff]  ;;  %v318_v46 = vld [vmem:[#allocation5 + $0xd8] sm:$0xff]  ;;  %p597_p5 = por %p596_p4, %p595_p3 }
  0x2f   :  { %v476_v44 = vpack.c.bf16 %v300_v43, %v299_v42  ;;  %v478_v47 = vpack.c.bf16 %v318_v46, %v317_v45  ;;  %v301_v48 = vld [vmem:[#allocation5 + $0x50] sm:$0xff]  ;;  %v302_v49 = vld [vmem:[#allocation5 + $0x58] sm:$0xff]  ;;  %v319_v51 = vld [vmem:[#allocation5 + $0xe0] sm:$0xff] }
  0x30   :  { %528 = vset.pattern.permute.xlu1 %v624_v4  ;;  %527 = vset.pattern.permute.xlu0 %v624_v4  ;;  %v480_v50 = vpack.c.bf16 %v302_v49, %v301_v48  ;;  %v320_v52 = vld [vmem:[#allocation5 + $0xe8] sm:$0xff]  ;;  %v303_v54 = vld [vmem:[#allocation5 + $0x60] sm:$0xff]  ;;  %v321_v57 = vld [vmem:[#allocation5 + $0xf0] sm:$0xff]  ;;  %p598_p6 = pnand %p597_p5, %p591_p2 }
  0x31   :  { %91 = vperm.xlu1 %528, %v686_v3   ;;  %88 = vperm.xlu0 %527, %v682_v2   ;;  %v482_v53 = vpack.c.bf16 %v320_v52, %v319_v51  ;;  %v304_v55 = vld [vmem:[#allocation5 + $0x68] sm:$0xff]  ;;  %v322_v58 = vld [vmem:[#allocation5 + $0xf8] sm:$0xff]  ;;  %v305_v60 = vld [vmem:[#allocation5 + $0x70] sm:$0xff] }
  0x32   :  { %499 = vmatpush3.bf16.msra.mxu1 %v464_v25  ;;  %465 = vmatpush3.bf16.msra.mxu0 %v464_v25  ;;  %v484_v56 = vpack.c.bf16 %v304_v55, %v303_v54  ;;  %v486_v59 = vpack.c.bf16 %v322_v58, %v321_v57  ;;  %v306_v61 = vld [vmem:[#allocation5 + $0x78] sm:$0xff] }
  0x33   :  { %492 = vmatprep.subr.bf16.mxu1 %v466_v28  ;;  %467 = vmatprep.subr.bf16.mxu0 %v466_v28  ;;  %v488_v62 = vpack.c.bf16 %v306_v61, %v305_v60 }
  0x35   :  { %529 = vset.pattern.permute.xlu1 %v625_v5  ;;  %530 = vset.pattern.permute.xlu0 %v625_v5 }
  0x36   :  { %106 = vperm.xlu1 %529, %v682_v2   ;;  %109 = vperm.xlu0 %530, %v686_v3  }
  0x37   :  { %500 = vmatpush3.bf16.msra.mxu1 %v468_v31  ;;  %469 = vmatpush3.bf16.msra.mxu0 %v468_v31 }
  0x38   :  { %493 = vmatprep.subr.bf16.mxu1 %v470_v34  ;;  %471 = vmatprep.subr.bf16.mxu0 %v470_v34 }
  0x3a   :  { %531 = vset.pattern.permute.xlu1 %v626_v6  ;;  %532 = vset.pattern.permute.xlu0 %v627_v7 }
  0x3b   :  { %124 = vperm.xlu1 %531, %v682_v2   ;;  %142 = vperm.xlu0 %532, %v682_v2  }
  0x3c   :  { %501 = vmatpush3.bf16.msra.mxu1 %v472_v37  ;;  %473 = vmatpush3.bf16.msra.mxu0 %v472_v37 }
  0x3d   :  { %494 = vmatprep.subr.bf16.mxu1 %v474_v41  ;;  %475 = vmatprep.subr.bf16.mxu0 %v474_v41 }
  0x3f   :  { %127 = vperm.xlu1 %531, %v686_v3   ;;  %535 = vset.pattern.permute.xlu0 %v628_v8 }
  0x40   :  { %163 = vperm.xlu0 %535, %v686_v3   ;;  %502 = vmatpush3.bf16.msra.mxu1 %v476_v44 }
  0x41   :  { %477 = vmatpush3.bf16.msra.mxu0 %v476_v44  ;;  %495 = vmatprep.subr.bf16.mxu1 %v478_v47 }
  0x42   :  { %479 = vmatprep.subr.bf16.mxu0 %v478_v47 }
  0x43   :  { %533 = vset.pattern.permute.xlu1 %v627_v7  ;;  %v49_v7 = vlaneseq }
  0x44   :  { %145 = vperm.xlu1 %533, %v686_v3   ;;  %537 = vset.pattern.permute.xlu0 %v629_v9 }
  0x45   :  { %196 = vperm.xlu0 %537, %v682_v2   ;;  %503 = vmatpush3.bf16.msra.mxu1 %v480_v50 }
  0x46   :  { %481 = vmatpush3.bf16.msra.mxu0 %v480_v50  ;;  %496 = vmatprep.subr.bf16.mxu1 %v482_v53 }
  0x47   :  { %483 = vmatprep.subr.bf16.mxu0 %v482_v53 }
  0x48   :  { %534 = vset.pattern.permute.xlu1 %v628_v8 }
  0x49   :  { %160 = vperm.xlu1 %534, %v682_v2   ;;  %540 = vset.pattern.permute.xlu0 %v630_v10 }
  0x4a   :  { %217 = vperm.xlu0 %540, %v686_v3   ;;  %504 = vmatpush3.bf16.msra.mxu1 %v484_v56 }
  0x4b   :  { %485 = vmatpush3.bf16.msra.mxu0 %v484_v56  ;;  %497 = vmatprep.subr.bf16.mxu1 %v486_v59 }
  0x4c   :  { %487 = vmatprep.subr.bf16.mxu0 %v486_v59 }
  0x4d   :  { %536 = vset.pattern.permute.xlu1 %v631_v11 }
  0x4e   :  { %178 = vperm.xlu1 %536, %v682_v2   ;;  %542 = vset.pattern.permute.xlu0 %v632_v12 }
  0x4f   :  { %250 = vperm.xlu0 %542, %v682_v2   ;;  %505 = vmatpush3.bf16.msra.mxu1 %v488_v62 }
  0x50   :  { %489 = vmatpush3.bf16.msra.mxu0 %v488_v62 }
  0x52   :  { %181 = vperm.xlu1 %536, %v686_v3  }
  0x53   :  { %545 = vset.pattern.permute.xlu0 %v633_v19 }
  0x54   :  { %271 = vperm.xlu0 %545, %v686_v3  }
  0x56   :  { %538 = vset.pattern.permute.xlu1 %v629_v9 }
  0x57   :  { %199 = vperm.xlu1 %538, %v686_v3  }
  0x5b   :  { %539 = vset.pattern.permute.xlu1 %v630_v10  ;;  %v718_v10 = vand.u32 127, %v49_v7 }
  0x5c   :  { %214 = vperm.xlu1 %539, %v682_v2  }
  0x60   :  { %541 = vset.pattern.permute.xlu1 %v634_v38 }
  0x61   :  { %232 = vperm.xlu1 %541, %v682_v2  }
  0x65   :  { %235 = vperm.xlu1 %541, %v686_v3  }
  0x69   :  { %543 = vset.pattern.permute.xlu1 %v632_v12 }
  0x6a   :  { %253 = vperm.xlu1 %543, %v686_v3  }
  0x6e   :  { %544 = vset.pattern.permute.xlu1 %v633_v19 }
  0x6f   :  { %268 = vperm.xlu1 %544, %v682_v2   ;;  %v723_v2 = vadd.s32 128, %v718_v10 }
  0xa7   :  { %v71_v63 = vpop.permute.xlu1 %70  ;;  %v57_v5 = vpop.permute.xlu0 %56 }
  0xa8   :  { %vm75_vm0 = vcmp.eq.s32.totalorder %v71_v63, %v718_v10  ;;  %vm76_vm1 = vcmp.eq.s32.totalorder %v71_v63, %v723_v2  ;;  %vm61_vm2 = vcmp.eq.s32.totalorder %v57_v5, %v718_v10  ;;  %vm62_vm3 = vcmp.eq.s32.totalorder %v57_v5, %v723_v2 }
  0xa9   :  { %v79_v14 = vsel %vm75_vm0, 1, %v623_v1  ;;  %v80_v15 = vsel %vm76_vm1, 1, %v623_v1  ;;  %v65_v17 = vsel %vm61_vm2, 1, %v623_v1  ;;  %v66_v18 = vsel %vm62_vm3, 1, %v623_v1 }
  0xaa   :  { %v83_v26 = vadd.s32 %v79_v14, %v65_v17  ;;  %v84_v27 = vadd.s32 %v80_v15, %v66_v18 }
  0xab   :  { %v74_v0 = vpop.permute.xlu1 %73  ;;  %v60_v9 = vpop.permute.xlu0 %59 }
  0xac   :  { %vm77_vm4 = vcmp.eq.s32.totalorder %v74_v0, %v718_v10  ;;  %vm78_vm5 = vcmp.eq.s32.totalorder %v74_v0, %v723_v2  ;;  %vm63_vm6 = vcmp.eq.s32.totalorder %v60_v9, %v718_v10  ;;  %vm64_vm7 = vcmp.eq.s32.totalorder %v60_v9, %v723_v2 }
  0xad   :  { %v81_v19 = vsel %vm77_vm4, 1, %v623_v1  ;;  %v82_v20 = vsel %vm78_vm5, 1, %v623_v1  ;;  %v67_v21 = vsel %vm63_vm6, 1, %v623_v1  ;;  %v68_v22 = vsel %vm64_vm7, 1, %v623_v1 }
  0xae   :  { %v85_v29 = vadd.s32 %v81_v19, %v67_v21  ;;  %v86_v30 = vadd.s32 %v82_v20, %v68_v22 }
  0xb0   :  { %v92_v3 = vpop.permute.xlu1 %91  ;;  %v89_v12 = vpop.permute.xlu0 %88 }
  0xb1   :  { %vm93_vm8 = vcmp.eq.s32.totalorder %v89_v12, %v718_v10  ;;  %vm94_vm9 = vcmp.eq.s32.totalorder %v89_v12, %v723_v2  ;;  %vm95_vm12 = vcmp.eq.s32.totalorder %v92_v3, %v718_v10  ;;  %vm96_vm13 = vcmp.eq.s32.totalorder %v92_v3, %v723_v2 }
  0xb2   :  { %v97_v24 = vsel %vm93_vm8, 1, %v623_v1  ;;  %v98_v25 = vsel %vm94_vm9, 1, %v623_v1  ;;  %v99_v33 = vsel %vm95_vm12, 1, %v623_v1  ;;  %v100_v34 = vsel %vm96_vm13, 1, %v623_v1 }
  0xb3   :  { %v101_v35 = vadd.s32 %v97_v24, %v83_v26  ;;  %v102_v36 = vadd.s32 %v98_v25, %v84_v27  ;;  %v103_v43 = vadd.s32 %v99_v33, %v85_v29  ;;  %v104_v44 = vadd.s32 %v100_v34, %v86_v30 }
  0xb5   :  { %v107_v4 = vpop.permute.xlu1 %106  ;;  %v110_v16 = vpop.permute.xlu0 %109 }
  0xb6   :  { %vm111_vm10 = vcmp.eq.s32.totalorder %v107_v4, %v718_v10  ;;  %vm112_vm11 = vcmp.eq.s32.totalorder %v107_v4, %v723_v2  ;;  %vm113_vm0 = vcmp.eq.s32.totalorder %v110_v16, %v718_v10  ;;  %vm114_vm1 = vcmp.eq.s32.totalorder %v110_v16, %v723_v2 }
  0xb7   :  { %v115_v31 = vsel %vm111_vm10, 1, %v623_v1  ;;  %v116_v32 = vsel %vm112_vm11, 1, %v623_v1  ;;  %v117_v45 = vsel %vm113_vm0, 1, %v623_v1  ;;  %v118_v46 = vsel %vm114_vm1, 1, %v623_v1 }
  0xb8   :  { %v119_v40 = vadd.s32 %v115_v31, %v101_v35  ;;  %v120_v41 = vadd.s32 %v116_v32, %v102_v36  ;;  %v121_v55 = vadd.s32 %v117_v45, %v103_v43  ;;  %v122_v56 = vadd.s32 %v118_v46, %v104_v44 }
  0xba   :  { %v125_v6 = vpop.permute.xlu1 %124  ;;  %v143_v28 = vpop.permute.xlu0 %142 }
  0xbb   :  { %vm129_vm14 = vcmp.eq.s32.totalorder %v125_v6, %v718_v10  ;;  %vm130_vm15 = vcmp.eq.s32.totalorder %v125_v6, %v723_v2  ;;  %vm147_vm2 = vcmp.eq.s32.totalorder %v143_v28, %v718_v10  ;;  %vm148_vm3 = vcmp.eq.s32.totalorder %v143_v28, %v723_v2 }
  0xbc   :  { %v133_v38 = vsel %vm129_vm14, 1, %v623_v1  ;;  %v134_v39 = vsel %vm130_vm15, 1, %v623_v1  ;;  %v151_v49 = vsel %vm147_vm2, 1, %v623_v1  ;;  %v152_v50 = vsel %vm148_vm3, 1, %v623_v1 }
  0xbd   :  { %v137_v47 = vadd.s32 %v133_v38, %v119_v40  ;;  %v138_v48 = vadd.s32 %v134_v39, %v120_v41 }
  0xbe   :  { %v716_v8 = vpop.permute.xlu1 %127 }
  0xbf   :  { %v164_v42 = vpop.permute.xlu0 %163  ;;  %vm131_vm4 = vcmp.eq.s32.totalorder %v716_v8, %v718_v10  ;;  %vm132_vm5 = vcmp.eq.s32.totalorder %v716_v8, %v723_v2  ;;  %v155_v57 = vadd.s32 %v151_v49, %v137_v47  ;;  %v156_v58 = vadd.s32 %v152_v50, %v138_v48 }
  0xc0   :  { %v135_v52 = vsel %vm131_vm4, 1, %v623_v1  ;;  %v136_v53 = vsel %vm132_vm5, 1, %v623_v1  ;;  %vm167_vm8 = vcmp.eq.s32.totalorder %v164_v42, %v718_v10  ;;  %vm168_vm9 = vcmp.eq.s32.totalorder %v164_v42, %v723_v2 }
  0xc1   :  { %v139_v61 = vadd.s32 %v135_v52, %v121_v55  ;;  %v140_v62 = vadd.s32 %v136_v53, %v122_v56  ;;  %v171_v63 = vsel %vm167_vm8, 1, %v623_v1  ;;  %v172_v0 = vsel %vm168_vm9, 1, %v623_v1 }
  0xc3   :  { %v720_v11 = vpop.permute.xlu1 %145 }
  0xc4   :  { %vm149_vm6 = vcmp.eq.s32.totalorder %v720_v11, %v718_v10  ;;  %vm150_vm7 = vcmp.eq.s32.totalorder %v720_v11, %v723_v2  ;;  %v197_v54 = vpop.permute.xlu0 %196 }
  0xc5   :  { %v153_v59 = vsel %vm149_vm6, 1, %v623_v1  ;;  %v154_v60 = vsel %vm150_vm7, 1, %v623_v1  ;;  %vm201_vm10 = vcmp.eq.s32.totalorder %v197_v54, %v718_v10  ;;  %vm202_vm11 = vcmp.eq.s32.totalorder %v197_v54, %v723_v2 }
  0xc6   :  { %v157_v5 = vadd.s32 %v153_v59, %v139_v61  ;;  %v158_v6 = vadd.s32 %v154_v60, %v140_v62  ;;  %v205_v7 = vsel %vm201_vm10, 1, %v623_v1  ;;  %v206_v8 = vsel %vm202_vm11, 1, %v623_v1 }
  0xc8   :  { %v727_v13 = vpop.permute.xlu1 %160  ;;  %v175_v15 = vadd.s32 %v171_v63, %v157_v5  ;;  %v176_v16 = vadd.s32 %v172_v0, %v158_v6 }
  0xc9   :  { %vm165_vm12 = vcmp.eq.s32.totalorder %v727_v13, %v718_v10  ;;  %vm166_vm13 = vcmp.eq.s32.totalorder %v727_v13, %v723_v2  ;;  %v218_v3 = vpop.permute.xlu0 %217 }
  0xca   :  { %v169_v9 = vsel %vm165_vm12, 1, %v623_v1  ;;  %v170_v11 = vsel %vm166_vm13, 1, %v623_v1  ;;  %vm221_vm4 = vcmp.eq.s32.totalorder %v218_v3, %v718_v10  ;;  %vm222_vm5 = vcmp.eq.s32.totalorder %v218_v3, %v723_v2 }
  0xcb   :  { %v173_v20 = vadd.s32 %v169_v9, %v155_v57  ;;  %v174_v21 = vadd.s32 %v170_v11, %v156_v58  ;;  %v225_v26 = vsel %vm221_vm4, 1, %v623_v1  ;;  %v226_v27 = vsel %vm222_vm5, 1, %v623_v1 }
  0xcd   :  { %v747_v23 = vpop.permute.xlu1 %178 }
  0xce   :  { %vm183_vm0 = vcmp.eq.s32.totalorder %v747_v23, %v718_v10  ;;  %vm184_vm1 = vcmp.eq.s32.totalorder %v747_v23, %v723_v2  ;;  %v251_v14 = vpop.permute.xlu0 %250 }
  0xcf   :  { %v187_v17 = vsel %vm183_vm0, 1, %v623_v1  ;;  %v188_v18 = vsel %vm184_vm1, 1, %v623_v1  ;;  %vm255_vm8 = vcmp.eq.s32.totalorder %v251_v14, %v718_v10  ;;  %vm256_vm9 = vcmp.eq.s32.totalorder %v251_v14, %v723_v2 }
  0xd0   :  { %v191_v28 = vadd.s32 %v187_v17, %v173_v20  ;;  %v192_v29 = vadd.s32 %v188_v18, %v174_v21  ;;  %v259_v55 = vsel %vm255_vm8, 1, %v623_v1  ;;  %v260_v56 = vsel %vm256_vm9, 1, %v623_v1 }
  0xd1   :  { %v182_v37 = vpop.permute.xlu1 %181 }
  0xd2   :  { %vm185_vm14 = vcmp.eq.s32.totalorder %v182_v37, %v718_v10  ;;  %vm186_vm15 = vcmp.eq.s32.totalorder %v182_v37, %v723_v2  ;;  %v209_v36 = vadd.s32 %v205_v7, %v191_v28  ;;  %v210_v37 = vadd.s32 %v206_v8, %v192_v29 }
  0xd3   :  { %v189_v12 = vsel %vm185_vm14, 1, %v623_v1  ;;  %v190_v13 = vsel %vm186_vm15, 1, %v623_v1  ;;  %v272_v30 = vpop.permute.xlu0 %271 }
  0xd4   :  { %v193_v24 = vadd.s32 %v189_v12, %v175_v15  ;;  %v194_v25 = vadd.s32 %v190_v13, %v176_v16  ;;  %vm275_vm14 = vcmp.eq.s32.totalorder %v272_v30, %v718_v10  ;;  %vm276_vm15 = vcmp.eq.s32.totalorder %v272_v30, %v723_v2 }
  0xd5   :  { %v279_v47 = vsel %vm275_vm14, 1, %v623_v1  ;;  %v280_v48 = vsel %vm276_vm15, 1, %v623_v1 }
  0xd6   :  { %v200_v51 = vpop.permute.xlu1 %199 }
  0xd7   :  { %vm203_vm2 = vcmp.eq.s32.totalorder %v200_v51, %v718_v10  ;;  %vm204_vm3 = vcmp.eq.s32.totalorder %v200_v51, %v723_v2 }
  0xd8   :  { %v207_v22 = vsel %vm203_vm2, 1, %v623_v1  ;;  %v208_v23 = vsel %vm204_vm3, 1, %v623_v1 }
  0xd9   :  { %v211_v31 = vadd.s32 %v207_v22, %v193_v24  ;;  %v212_v32 = vadd.s32 %v208_v23, %v194_v25 }
  0xdb   :  { %v215_v4 = vpop.permute.xlu1 %214  ;;  %v229_v40 = vadd.s32 %v225_v26, %v211_v31  ;;  %v230_v41 = vadd.s32 %v226_v27, %v212_v32 }
  0xdc   :  { %vm219_vm6 = vcmp.eq.s32.totalorder %v215_v4, %v718_v10  ;;  %vm220_vm7 = vcmp.eq.s32.totalorder %v215_v4, %v723_v2 }
  0xdd   :  { %v223_v34 = vsel %vm219_vm6, 1, %v623_v1  ;;  %v224_v35 = vsel %vm220_vm7, 1, %v623_v1 }
  0xde   :  { %v227_v44 = vadd.s32 %v223_v34, %v209_v36  ;;  %v228_v45 = vadd.s32 %v224_v35, %v210_v37 }
  0xe0   :  { %v233_v19 = vpop.permute.xlu1 %232 }
  0xe1   :  { %vm237_vm10 = vcmp.eq.s32.totalorder %v233_v19, %v718_v10  ;;  %vm238_vm11 = vcmp.eq.s32.totalorder %v233_v19, %v723_v2 }
  0xe2   :  { %v241_v42 = vsel %vm237_vm10, 1, %v623_v1  ;;  %v242_v43 = vsel %vm238_vm11, 1, %v623_v1 }
  0xe3   :  { %v245_v51 = vadd.s32 %v241_v42, %v227_v44  ;;  %v246_v52 = vadd.s32 %v242_v43, %v228_v45 }
  0xe4   :  { %v236_v33 = vpop.permute.xlu1 %235 }
  0xe5   :  { %vm239_vm12 = vcmp.eq.s32.totalorder %v236_v33, %v718_v10  ;;  %vm240_vm13 = vcmp.eq.s32.totalorder %v236_v33, %v723_v2  ;;  %v263_v62 = vadd.s32 %v259_v55, %v245_v51  ;;  %v264_v63 = vadd.s32 %v260_v56, %v246_v52 }
  0xe6   :  { %v243_v38 = vsel %vm239_vm12, 1, %v623_v1  ;;  %v244_v39 = vsel %vm240_vm13, 1, %v623_v1 }
  0xe7   :  { %v247_v49 = vadd.s32 %v243_v38, %v229_v40  ;;  %v248_v50 = vadd.s32 %v244_v39, %v230_v41 }
  0xe9   :  { %v254_v46 = vpop.permute.xlu1 %253 }
  0xea   :  { %vm257_vm0 = vcmp.eq.s32.totalorder %v254_v46, %v718_v10  ;;  %vm258_vm1 = vcmp.eq.s32.totalorder %v254_v46, %v723_v2 }
  0xeb   :  { %v261_v53 = vsel %vm257_vm0, 1, %v623_v1  ;;  %v262_v54 = vsel %vm258_vm1, 1, %v623_v1 }
  0xec   :  { %v265_v57 = vadd.s32 %v261_v53, %v247_v49  ;;  %v266_v58 = vadd.s32 %v262_v54, %v248_v50 }
  0xee   :  { %v283_v59 = vadd.s32 %v279_v47, %v265_v57  ;;  %v269_v60 = vpop.permute.xlu1 %268  ;;  %v284_v61 = vadd.s32 %v280_v48, %v266_v58 }
  0xef   :  { %vm273_vm2 = vcmp.eq.s32.totalorder %v269_v60, %v718_v10  ;;  %vm274_vm3 = vcmp.eq.s32.totalorder %v269_v60, %v723_v2 }
  0xf0   :  { %v289_v0 = vcvt.s32.f32 %v283_v59  ;;  %v277_v3 = vsel %vm273_vm2, 1, %v623_v1  ;;  %v290_v4 = vcvt.s32.f32 %v284_v61  ;;  %v278_v5 = vsel %vm274_vm3, 1, %v623_v1 }
  0xf1   :  { %v281_v6 = vadd.s32 %v277_v3, %v263_v62  ;;  %v282_v7 = vadd.s32 %v278_v5, %v264_v63 }
  0xf2   :  { %392 = vmatprep.mubr.f32.mxu1 %v290_v4 }
  0xf3   :  { %v287_v8 = vcvt.s32.f32 %v281_v6  ;;  %393 = vmatmul.mubr.f32.vlgmr.msra.gmra.mrb[0].mxu1 %v289_v0  ;;  %v288_v9 = vcvt.s32.f32 %v282_v7 }
  0xf5   :  { %387 = vmatprep.mubr.f32.mxu0 %v288_v9 }
  0xf6   :  { %388 = vmatmul.mubr.f32.vlgmr.msra.gmra.mrb[0].mxu0 %v287_v8 }
 0x1c6   :  { %v455_v11 = vpop.f32.mrb[0].mxu1 }
 0x1c7   :  { %v456_v12 = vpop.f32.mrb[1].mxu1 }
 0x1c8   :  { %v457_v10 = vadd.f32 %v456_v12, %v455_v11 }
 0x1c9   :  { %v452_v13 = vpop.f32.mrb[0].mxu0 }
 0x1ca   :  { %v453_v2 = vpop.f32.mrb[1].mxu0  ;;  %401 = vst [vmem:[#allocation7 + $0x8] sm:$0xff] %v457_v10 }
 0x1cb   :  { %v454_v14 = vadd.f32 %v453_v2, %v452_v13 }
 0x1cd   :  { %400 = vst [vmem:[#allocation7] sm:$0xff] %v454_v14 }
 0x1ce   :  { %601 = shalt.err (!%p598_p6)
}
 0x1cf   :  { %s602_s10 = scalar_lea.hbm %s862_s2, 256 }
 0x1d0   :  { %p603_p7 = scmp.ne.s32.totalorder %s862_s2, %s602_s10  ;;  %p606_p8 = scmp.lt.u32.totalorder %s602_s10, %s862_s2 }
 0x1d2   :  { %p608_p9 = pnand %p606_p8, %p603_p7 }
 0x1d4   :  { %611 = shalt.err (!%p608_p9)
}
 0x1d5   :  { %413 = dma.vmem_to_hbm [thread:$0]  %s408_s6, 256, %s862_s2, [#allocation4], %s619_s19, %s619_s19, %s620_s20  }
 0x1d6   :  { %616 = dma.done.wait [#allocation4], 256  }
 0x1d7   :  { %617 = vsyncadd [#allocation4], 4294967040 }
 0x1d8   :  { %417 = vsyncpa [#allocation3], 1 }
 0x1d9   :  { %418 = vsyncpa [#allocation6], 1 }
 0x1da   :  { %419 = vsyncpa [#allocation4], 1 }

</bundles_post_ra>
